<compile_context>
chip_gen: v7x
topology: tpu7x:2x2x1
jax: 0.10.0
libtpu: 0.0.40
codegen_flags: <defaults>
</compile_context>

<pallas_src>
import functools

import jax
import jax.numpy as jnp
from jax.experimental import pallas as pl
from jax.experimental.pallas import tpu as pltpu

HEAD_W = 128   # fused mean|logvar head width: one lane-dense 128-lane slab
LV_OFF = 64    # logvar columns start at lane 64 inside the fused head
EPS_W = 8      # latent (=2) padded to 8 lanes for the eps / z slabs


def vae_forward_kernel(x_ref, w1_ref, b1_ref, w2_ref, b2_ref,
                       wh_ref, bh_ref, eps_ref, z_ref):
    bf16 = jnp.bfloat16
    # encoder layer 1: Linear + Tanh (bf16 MXU operands, f32 accumulate / activation)
    h1 = jnp.tanh(
        jnp.dot(x_ref[...].astype(bf16), w1_ref[...],
                preferred_element_type=jnp.float32) + b1_ref[...]
    )
    # encoder layer 2: Linear + Tanh
    h2 = jnp.tanh(
        jnp.dot(h1.astype(bf16), w2_ref[...],
                preferred_element_type=jnp.float32) + b2_ref[...]
    )
    # fused head: single (TB, 128) matmul; mean in lanes [0:latent),
    # logvar in lanes [LV_OFF:LV_OFF+latent)
    head = (jnp.dot(h2.astype(bf16), wh_ref[...],
                    preferred_element_type=jnp.float32) + bh_ref[...])
    mean = head[:, :EPS_W]
    logvar = head[:, LV_OFF:LV_OFF + EPS_W]
    # reparameterization exactly as in the PyTorch module: z = mean + logvar * eps
    # TODO(synk): a standard VAE uses std = exp(0.5*logvar); the module multiplies by
    # logvar directly — reproduced as-is.
    z_ref[...] = mean + logvar * eps_ref[...]


def _round_up(x, m):
    return ((x + m - 1) // m) * m


@functools.partial(jax.jit, static_argnames=("block_b",))
def vae_forward(x, w1, b1, w2, b2, wm, bm, wv, bv, eps, *, block_b=512):
    B, input_size = x.shape
    hidden = w1.shape[1]
    feat = w2.shape[1]
    latent = wm.shape[1]
    assert latent <= EPS_W and LV_OFF + latent <= HEAD_W
    bf16 = jnp.bfloat16

    # ---- batch tiling --------------------------------------------------------
    block_b = _round_up(max(block_b, 8), 8)
    TB = min(block_b, _round_up(B, 8))
    if B > 8:
        # cap TB so the grid has >= 2 steps: lets the "parallel" batch axis split
        # across the 2 TensorCores on v7x and keeps the DMA pipeline overlapped.
        TB = min(TB, _round_up((B + 1) // 2, 8))
    TB = max(TB, 8)
    B_pad = _round_up(B, TB)

    # only materialize a padded x when the batch is ragged (avoid an extra full
    # HBM read+write pass over the dominant stream on the common path)
    if B_pad != B:
        x_in = jnp.zeros((B_pad, input_size), x.dtype).at[:B].set(x)
    else:
        x_in = x
    # eps slab is only 8 lanes wide -> padding it is ~32 B/row, negligible
    eps_in = jnp.zeros((B_pad, EPS_W), jnp.float32).at[:B, :latent].set(eps)

    # ---- fuse + pad the mean/logvar heads into one 128-lane slab -------------
    wh = (jnp.zeros((feat, HEAD_W), jnp.float32)
          .at[:, :latent].set(wm)
          .at[:, LV_OFF:LV_OFF + latent].set(wv))
    bh = (jnp.zeros((1, HEAD_W), jnp.float32)
          .at[:, :latent].set(bm)
          .at[:, LV_OFF:LV_OFF + latent].set(bv))

    # bf16 weights for the MXU (one-time cast of <1 MiB of weights; biases stay f32)
    w1_bf, w2_bf, wh_bf = w1.astype(bf16), w2.astype(bf16), wh.astype(bf16)

    grid = (B_pad // TB,)
    batch_map = lambda i: (i, 0)
    const_map = lambda i: (0, 0)

    in_specs = [
        pl.BlockSpec((TB, input_size), batch_map),       # x (streamed)
        pl.BlockSpec((input_size, hidden), const_map),   # W1 (VMEM-resident)
        pl.BlockSpec((1, hidden), const_map),            # b1
        pl.BlockSpec((hidden, feat), const_map),         # W2
        pl.BlockSpec((1, feat), const_map),              # b2
        pl.BlockSpec((feat, HEAD_W), const_map),         # fused head weight
        pl.BlockSpec((1, HEAD_W), const_map),            # fused head bias
        pl.BlockSpec((TB, EPS_W), batch_map),            # eps (streamed, 8 lanes)
    ]
    out_spec = pl.BlockSpec((TB, EPS_W), batch_map)      # z slab (8 lanes)

    # ---- VMEM budget: double-buffered streams + resident weights + headroom --
    x_bytes = x_in.dtype.itemsize
    vmem_needed = (
        2 * TB * input_size * x_bytes                       # x double buffer
        + 4 * TB * EPS_W * 4                                # eps + z double buffers
        + 2 * (input_size * hidden + hidden * feat + feat * HEAD_W)  # bf16 weights
        + 4 * (hidden + feat + HEAD_W)                      # f32 biases
        + 3 * 4 * TB * (hidden + feat + HEAD_W)             # h1/h2/head temporaries
    )
    vmem_limit = min(max(2 * vmem_needed, 32 << 20), 48 << 20)

    # ---- advisory cost estimate for the XLA scheduler -------------------------
    flops = 2 * B_pad * (input_size * hidden + hidden * feat + feat * HEAD_W)
    transcendentals = B_pad * (hidden + feat)
    bytes_accessed = (
        B_pad * input_size * x_bytes                      # x
        + 2 * B_pad * EPS_W * 4                           # eps + z
        + 2 * (input_size * hidden + hidden * feat + feat * HEAD_W)  # weights
        + 4 * (hidden + feat + HEAD_W)                    # biases
    )

    z_pad = pl.pallas_call(
        vae_forward_kernel,
        out_shape=jax.ShapeDtypeStruct((B_pad, EPS_W), jnp.float32),
        grid_spec=pltpu.PrefetchScalarGridSpec(
            num_scalar_prefetch=0,
            grid=grid,
            in_specs=in_specs,
            out_specs=out_spec,
        ),
        compiler_params=pltpu.CompilerParams(
            dimension_semantics=("parallel",),   # batch axis: 2-TC sharding on v7x
            vmem_limit_bytes=vmem_limit,
        ),
        cost_estimate=pl.CostEstimate(
            flops=flops,
            transcendentals=transcendentals,
            bytes_accessed=bytes_accessed,
        ),
    )(x_in, w1_bf, b1, w2_bf, b2, wh_bf, bh, eps_in)

    # final slice now touches only B_pad*EPS_W*4 bytes (16x less than before)
    return z_pad[:B, :latent]


def init_params(key, input_size, hidden_size, feature_dim, latent=2):
    """Deterministic synthetic parameters (PyTorch nn.Linear shapes, pre-transposed)."""
    ks = jax.random.split(key, 8)

    def lin(kw, kb, fan_in, fan_out):
        bound = 1.0 / jnp.sqrt(fan_in)
        w = jax.random.uniform(kw, (fan_in, fan_out), jnp.float32, -bound, bound)
        b = jax.random.uniform(kb, (1, fan_out), jnp.float32, -bound, bound)
        return w, b

    w1, b1 = lin(ks[0], ks[1], input_size, hidden_size)
    w2, b2 = lin(ks[2], ks[3], hidden_size, feature_dim)
    wm, bm = lin(ks[4], ks[5], feature_dim, latent)
    wv, bv = lin(ks[6], ks[7], feature_dim, latent)
    return w1, b1, w2, b2, wm, bm, wv, bv


def vae_forward_ref(x, w1, b1, w2, b2, wm, bm, wv, bv, eps):
    """Pure-JAX reference with the same mixed precision (bf16 operands, f32 acc)."""
    bf16 = jnp.bfloat16

    def mm(a, w):
        return jnp.dot(a.astype(bf16), w.astype(bf16),
                       preferred_element_type=jnp.float32)

    h1 = jnp.tanh(mm(x, w1) + b1)
    h2 = jnp.tanh(mm(h1, w2) + b2)
    mean = mm(h2, wm) + bm
    logvar = mm(h2, wv) + bv
    # module multiplies by logvar (not exp(0.5*logvar)); reproduced as-is.
    return mean + logvar * eps


if __name__ == "__main__":
    # Small shapes consistent with the module (defaults are 784/400/200, latent=2).
    INPUT, HIDDEN, FEAT, LATENT = 256, 128, 64, 2

    key = jax.random.PRNGKey(0)
    k_params, k_x, k_eps = jax.random.split(key, 3)
    params = init_params(k_params, INPUT, HIDDEN, FEAT, LATENT)

    # --- case 1: single-tile batch, unpadded fast path -----------------------
    B = 8
    x = jax.random.normal(k_x, (B, INPUT), jnp.float32)
    # epsilon = torch.randn_like(logvar): supplied deterministically from the host.
    eps = jax.random.normal(k_eps, (B, LATENT), jnp.float32)

    z = jax.block_until_ready(vae_forward(x, *params, eps))
    z_ref = vae_forward_ref(x, *params, eps)
    assert z.shape == (B, LATENT)
    assert jnp.allclose(z, z_ref, atol=1e-3, rtol=1e-3), "case1 mismatch vs reference"

    # --- case 2: multi-step grid with a ragged (padded) tail tile -------------
    B2 = 40
    x2 = jax.random.normal(jax.random.fold_in(k_x, 1), (B2, INPUT), jnp.float32)
    eps2 = jax.random.normal(jax.random.fold_in(k_eps, 1), (B2, LATENT), jnp.float32)

    z2 = jax.block_until_ready(vae_forward(x2, *params, eps2, block_b=16))
    z2_ref = vae_forward_ref(x2, *params, eps2)
    assert z2.shape == (B2, LATENT)
    assert jnp.allclose(z2, z2_ref, atol=1e-3, rtol=1e-3), "case2 mismatch vs reference"

    # --- case 3: multi-step grid, unpadded fast path (TB auto-capped to B/2) --
    B3 = 64
    x3 = jax.random.normal(jax.random.fold_in(k_x, 2), (B3, INPUT), jnp.float32)
    eps3 = jax.random.normal(jax.random.fold_in(k_eps, 2), (B3, LATENT), jnp.float32)

    z3 = jax.block_until_ready(vae_forward(x3, *params, eps3))
    z3_ref = vae_forward_ref(x3, *params, eps3)
    assert z3.shape == (B3, LATENT)
    assert jnp.allclose(z3, z3_ref, atol=1e-3, rtol=1e-3), "case3 mismatch vs reference"

    print("KERNEL_OK")
</pallas_src>

<mosaic_0001>
module attributes {stable_mosaic.version = 11 : i64} {
  func.func @vae_forward_kernel(%arg0: i32, %arg1: memref<8x256xf32, #tpu.memory_space<vmem>>, %arg2: memref<256x128xbf16, #tpu.memory_space<vmem>>, %arg3: memref<1x128xf32, #tpu.memory_space<vmem>>, %arg4: memref<128x64xbf16, #tpu.memory_space<vmem>>, %arg5: memref<1x64xf32, #tpu.memory_space<vmem>>, %arg6: memref<64x128xbf16, #tpu.memory_space<vmem>>, %arg7: memref<1x128xf32, #tpu.memory_space<vmem>>, %arg8: memref<8x8xf32, #tpu.memory_space<vmem>>, %arg9: memref<8x8xf32, #tpu.memory_space<vmem>>) attributes {dimension_semantics = [#tpu.dimension_semantics<parallel>], iteration_bounds = array<i64: 1>, scalar_prefetch = 0 : i64, scratch_operands = 0 : i64, tpu.core_type = #tpu.core_type<tc>, window_params = [{transform_indices = @transform_0, window_bounds = array<i64: 8, 256>}, {pipeline_mode = #tpu.pipeline_mode<synchronous>, transform_indices = @transform_1, window_bounds = array<i64: 256, 128>}, {pipeline_mode = #tpu.pipeline_mode<synchronous>, transform_indices = @transform_2, window_bounds = array<i64: 1, 128>}, {pipeline_mode = #tpu.pipeline_mode<synchronous>, transform_indices = @transform_3, window_bounds = array<i64: 128, 64>}, {pipeline_mode = #tpu.pipeline_mode<synchronous>, transform_indices = @transform_4, window_bounds = array<i64: 1, 64>}, {pipeline_mode = #tpu.pipeline_mode<synchronous>, transform_indices = @transform_5, window_bounds = array<i64: 64, 128>}, {pipeline_mode = #tpu.pipeline_mode<synchronous>, transform_indices = @transform_6, window_bounds = array<i64: 1, 128>}, {transform_indices = @transform_7, window_bounds = array<i64: 8, 8>}, {transform_indices = @transform_8, window_bounds = array<i64: 8, 8>}]} {
    %c0 = arith.constant 0 : index
    %c0_0 = arith.constant 0 : index
    %0 = vector.load %arg1[%c0, %c0_0] : memref<8x256xf32, #tpu.memory_space<vmem>>, vector<8x256xf32>
    %1 = arith.truncf %0 : vector<8x256xf32> to vector<8x256xbf16>
    %c0_1 = arith.constant 0 : index
    %c0_2 = arith.constant 0 : index
    %2 = vector.load %arg2[%c0_1, %c0_2] : memref<256x128xbf16, #tpu.memory_space<vmem>>, vector<256x128xbf16>
    %cst = arith.constant dense<0.000000e+00> : vector<8x128xf32>
    %3 = tpu.matmul %1, %2, %cst {dimension_numbers = #tpu.dot_dimension_numbers<[1], [0], [0], [1], [0, 0, 1, 1], [], []>} : vector<8x256xbf16>, vector<256x128xbf16>, vector<8x128xf32> -> vector<8x128xf32>
    %c0_3 = arith.constant 0 : index
    %c0_4 = arith.constant 0 : index
    %4 = vector.load %arg3[%c0_3, %c0_4] : memref<1x128xf32, #tpu.memory_space<vmem>>, vector<1x128xf32>
    %5 = vector.broadcast %4 : vector<1x128xf32> to vector<8x128xf32>
    %6 = arith.addf %3, %5 : vector<8x128xf32>
    %7 = math.tanh %6 : vector<8x128xf32>
    %8 = arith.truncf %7 : vector<8x128xf32> to vector<8x128xbf16>
    %c0_5 = arith.constant 0 : index
    %c0_6 = arith.constant 0 : index
    %9 = vector.load %arg4[%c0_5, %c0_6] : memref<128x64xbf16, #tpu.memory_space<vmem>>, vector<128x64xbf16>
    %cst_7 = arith.constant dense<0.000000e+00> : vector<8x64xf32>
    %10 = tpu.matmul %8, %9, %cst_7 {dimension_numbers = #tpu.dot_dimension_numbers<[1], [0], [0], [1], [0, 0, 1, 1], [], []>} : vector<8x128xbf16>, vector<128x64xbf16>, vector<8x64xf32> -> vector<8x64xf32>
    %c0_8 = arith.constant 0 : index
    %c0_9 = arith.constant 0 : index
    %11 = vector.load %arg5[%c0_8, %c0_9] : memref<1x64xf32, #tpu.memory_space<vmem>>, vector<1x64xf32>
    %12 = vector.broadcast %11 : vector<1x64xf32> to vector<8x64xf32>
    %13 = arith.addf %10, %12 : vector<8x64xf32>
    %14 = math.tanh %13 : vector<8x64xf32>
    %15 = arith.truncf %14 : vector<8x64xf32> to vector<8x64xbf16>
    %c0_10 = arith.constant 0 : index
    %c0_11 = arith.constant 0 : index
    %16 = vector.load %arg6[%c0_10, %c0_11] : memref<64x128xbf16, #tpu.memory_space<vmem>>, vector<64x128xbf16>
    %cst_12 = arith.constant dense<0.000000e+00> : vector<8x128xf32>
    %17 = tpu.matmul %15, %16, %cst_12 {dimension_numbers = #tpu.dot_dimension_numbers<[1], [0], [0], [1], [0, 0, 1, 1], [], []>} : vector<8x64xbf16>, vector<64x128xbf16>, vector<8x128xf32> -> vector<8x128xf32>
    %c0_13 = arith.constant 0 : index
    %c0_14 = arith.constant 0 : index
    %18 = vector.load %arg7[%c0_13, %c0_14] : memref<1x128xf32, #tpu.memory_space<vmem>>, vector<1x128xf32>
    %19 = vector.broadcast %18 : vector<1x128xf32> to vector<8x128xf32>
    %20 = arith.addf %17, %19 : vector<8x128xf32>
    %21 = vector.extract_strided_slice %20 {offsets = [0, 0], sizes = [8, 8], strides = [1, 1]} : vector<8x128xf32> to vector<8x8xf32>
    %22 = vector.extract_strided_slice %20 {offsets = [0, 64], sizes = [8, 8], strides = [1, 1]} : vector<8x128xf32> to vector<8x8xf32>
    %c0_15 = arith.constant 0 : index
    %c0_16 = arith.constant 0 : index
    %23 = vector.load %arg8[%c0_15, %c0_16] : memref<8x8xf32, #tpu.memory_space<vmem>>, vector<8x8xf32>
    %24 = arith.mulf %22, %23 : vector<8x8xf32>
    %25 = arith.addf %21, %24 : vector<8x8xf32>
    %c0_17 = arith.constant 0 : index
    %c0_18 = arith.constant 0 : index
    %26 = vector.load %arg9[%c0_17, %c0_18] : memref<8x8xf32, #tpu.memory_space<vmem>>, vector<8x8xf32>
    tpu.vector_store %arg9[%c0_17, %c0_18], %25 {strides = array<i32>} : memref<8x8xf32, #tpu.memory_space<vmem>>, vector<8x8xf32>,
    return
  }
  func.func @transform_0(%arg0: i32) -> (i32, i32) {
    %c0_i32 = arith.constant 0 : i32
    %c0_i32_0 = arith.constant 0 : i32
    return %arg0, %c0_i32 : i32, i32
  }
  func.func @transform_1(%arg0: i32) -> (i32, i32) {
    %c0_i32 = arith.constant 0 : i32
    %c0_i32_0 = arith.constant 0 : i32
    %c0_i32_1 = arith.constant 0 : i32
    return %c0_i32, %c0_i32_0 : i32, i32
  }
  func.func @transform_2(%arg0: i32) -> (i32, i32) {
    %c0_i32 = arith.constant 0 : i32
    %c0_i32_0 = arith.constant 0 : i32
    %c0_i32_1 = arith.constant 0 : i32
    return %c0_i32, %c0_i32_0 : i32, i32
  }
  func.func @transform_3(%arg0: i32) -> (i32, i32) {
    %c0_i32 = arith.constant 0 : i32
    %c0_i32_0 = arith.constant 0 : i32
    %c0_i32_1 = arith.constant 0 : i32
    return %c0_i32, %c0_i32_0 : i32, i32
  }
  func.func @transform_4(%arg0: i32) -> (i32, i32) {
    %c0_i32 = arith.constant 0 : i32
    %c0_i32_0 = arith.constant 0 : i32
    %c0_i32_1 = arith.constant 0 : i32
    return %c0_i32, %c0_i32_0 : i32, i32
  }
  func.func @transform_5(%arg0: i32) -> (i32, i32) {
    %c0_i32 = arith.constant 0 : i32
    %c0_i32_0 = arith.constant 0 : i32
    %c0_i32_1 = arith.constant 0 : i32
    return %c0_i32, %c0_i32_0 : i32, i32
  }
  func.func @transform_6(%arg0: i32) -> (i32, i32) {
    %c0_i32 = arith.constant 0 : i32
    %c0_i32_0 = arith.constant 0 : i32
    %c0_i32_1 = arith.constant 0 : i32
    return %c0_i32, %c0_i32_0 : i32, i32
  }
  func.func @transform_7(%arg0: i32) -> (i32, i32) {
    %c0_i32 = arith.constant 0 : i32
    %c0_i32_0 = arith.constant 0 : i32
    return %arg0, %c0_i32 : i32, i32
  }
  func.func @transform_8(%arg0: i32) -> (i32, i32) {
    %c0_i32 = arith.constant 0 : i32
    %c0_i32_0 = arith.constant 0 : i32
    return %arg0, %c0_i32 : i32, i32
  }
}

</mosaic_0001>

<bundles_post_ra>
// kernel: vae_forward.1
= control target key start
LH: loop header
LB: loop body
LE: loop exit
PB: predicated region body
PF: predicated region fallthrough
CT: control target
= control target key end

     0   :  { %v559_v1 = vmov 0.0   ;;  %vm560_vm0 = vmmov 0   ;;  %s561_s21 = smov 64   ;;  %vm363_vm1 = vcmask 523264   ;;  %vm418_vm2 = vcmask 64512   ;;  %s726_s1 = inlined_call_operand.vmem [shape: bf16[256,128], index: 1, kind: input, shape index: {}]   ;;  %s727_s0 = inlined_call_operand.vmem [shape: f32[8,256], index: 0, kind: input, shape index: {}]   ;;  %s728_s3 = inlined_call_operand.vmem [shape: bf16[128,64], index: 3, kind: input, shape index: {}]   ;;  %s729_s2 = inlined_call_operand.vmem [shape: f32[1,128], index: 2, kind: input, shape index: {}]   ;;  %s730_s5 = inlined_call_operand.vmem [shape: bf16[64,128], index: 5, kind: input, shape index: {}]   ;;  %s731_s7 = inlined_call_operand.vmem [shape: f32[8,8], index: 7, kind: input, shape index: {}]   ;;  %s732_s4 = inlined_call_operand.vmem [shape: f32[1,64], index: 4, kind: input, shape index: {}]   ;;  %s733_s6 = inlined_call_operand.vmem [shape: f32[1,128], index: 6, kind: input, shape index: {}]   ;;  %s734_s8 = inlined_call_operand.vmem [shape: f32[8,8], index: 8, kind: output, shape index: {}]  }
   0x1   :  { %v527_v0 = vld [vmem:[%s726_s1 + $0x40] sm:$0xff]   ;;  %492 = vmatprep.subr.bf16.mxu1 %v559_v1  ;;  %v529_v3 = vld [vmem:[%s726_s1 + $0x48] sm:$0xff]   ;;  %v531_v5 = vld [vmem:[%s726_s1 + $0x50] sm:$0xff]   ;;  %508 = vmatprep.mubr.msk.bf16.mxu1 %vm560_vm0, %v559_v1 }
   0x2   :  { %v528_v2 = vld [vmem:[%s726_s1] sm:$0xff]   ;;  %456 = vmatprep.subr.bf16.mxu0 %v527_v0  ;;  %v530_v4 = vld [vmem:[%s726_s1 + $0x8] sm:$0xff]   ;;  %v532_v6 = vld [vmem:[%s726_s1 + $0x10] sm:$0xff]  }
   0x3   :  { %457 = vmatpush3.bf16.msra.mxu0 %v528_v2  ;;  %v533_v7 = vld [vmem:[%s726_s1 + $0x58] sm:$0xff]   ;;  %v535_v9 = vld [vmem:[%s726_s1 + $0x60] sm:$0xff]   ;;  %v537_v11 = vld [vmem:[%s726_s1 + $0x68] sm:$0xff]  }
   0x4   :  { %458 = vmatprep.subr.bf16.mxu0 %v529_v3  ;;  %v534_v8 = vld [vmem:[%s726_s1 + $0x18] sm:$0xff]   ;;  %v536_v10 = vld [vmem:[%s726_s1 + $0x20] sm:$0xff]   ;;  %v31_v12 = vld [vmem:[%s727_s0 + $0x8] sm:$0xff] }
   0x5   :  { %v538_v13 = vld [vmem:[%s726_s1 + $0x28] sm:$0xff]   ;;  %v33_v14 = vpack.c.bf16 %v31_v12, %v31_v12  ;;  %v543_v15 = vld [vmem:[%s728_s3] sm:$0xff]   ;;  %v539_v16 = vld [vmem:[%s726_s1 + $0x70] sm:$0xff]  }
   0x6   :  { %v544_v17 = vld [vmem:[%s728_s3 + $0x8] sm:$0xff]   ;;  %493 = vmatpush3.bf16.msra.mxu1 %v543_v15  ;;  %v540_v18 = vld [vmem:[%s726_s1 + $0x30] sm:$0xff]   ;;  %v541_v19 = vld [vmem:[%s726_s1 + $0x78] sm:$0xff]  }
   0x7   :  { %459 = vmatpush3.bf16.msra.mxu0 %v530_v4  ;;  %201 = vmatprep.mubr.bf16.mxu0 %v33_v14  ;;  %v545_v20 = vld [vmem:[%s728_s3 + $0x10] sm:$0xff]   ;;  %v542_v21 = vld [vmem:[%s726_s1 + $0x38] sm:$0xff]   ;;  %v30_v22 = vld [vmem:[%s727_s0] sm:$0xff] }
   0x8   :  { %460 = vmatprep.subr.bf16.mxu0 %v531_v5  ;;  %494 = vmatprep.subr.bf16.mxu1 %v559_v1  ;;  %v32_v23 = vpack.c.bf16 %v30_v22, %v30_v22  ;;  %v546_v24 = vld [vmem:[%s728_s3 + $0x18] sm:$0xff]   ;;  %v547_v25 = vld [vmem:[%s728_s3 + $0x20] sm:$0xff]   ;;  %v548_v26 = vld [vmem:[%s728_s3 + $0x28] sm:$0xff]  }
   0x9   :  { %v549_v27 = vld [vmem:[%s728_s3 + $0x30] sm:$0xff]   ;;  %v550_v28 = vld [vmem:[%s728_s3 + $0x38] sm:$0xff]   ;;  %v424_v30 = vld [vmem:[%s729_s2] ss:$0 sm:$0xff] }
   0xa   :  { %495 = vmatpush3.bf16.msra.mxu1 %v544_v17  ;;  %v551_v38 = vld [vmem:[%s730_s5] sm:$0xff]   ;;  %v552_v39 = vld [vmem:[%s730_s5 + $0x8] sm:$0xff]   ;;  %v553_v40 = vld [vmem:[%s730_s5 + $0x10] sm:$0xff]  }
   0xb   :  { %461 = vmatpush3.bf16.msra.mxu0 %v532_v6  ;;  %496 = vmatprep.subr.bf16.mxu1 %v559_v1  ;;  %v554_v41 = vld [vmem:[%s730_s5 + $0x18] sm:$0xff]   ;;  %v407_v42 = vld [vmem:[%s731_s7] sm:$0xff] }
   0xc   :  { %462 = vmatprep.subr.bf16.mxu0 %v533_v7  ;;  %409 = vrot.lane.b32.xlu0 %v407_v42, %s561_s21  ;;  %v441_v43 = vld [vmem:[%s732_s4] ss:$0 sm:$0xff] }
   0xd   :  { %v450_v51 = vld [vmem:[%s733_s6] ss:$0 sm:$0xff] }
   0xe   :  { %497 = vmatpush3.bf16.msra.mxu1 %v545_v20 }
   0xf   :  { %463 = vmatpush3.bf16.msra.mxu0 %v534_v8  ;;  %498 = vmatprep.subr.bf16.mxu1 %v559_v1 }
  0x10   :  { %464 = vmatprep.subr.bf16.mxu0 %v535_v9 }
  0x12   :  { %499 = vmatpush3.bf16.msra.mxu1 %v546_v24 }
  0x13   :  { %465 = vmatpush3.bf16.msra.mxu0 %v536_v10  ;;  %500 = vmatprep.subr.bf16.mxu1 %v559_v1 }
  0x14   :  { %466 = vmatprep.subr.bf16.mxu0 %v537_v11 }
  0x16   :  { %501 = vmatpush3.bf16.msra.mxu1 %v547_v25 }
  0x17   :  { %467 = vmatpush3.bf16.msra.mxu0 %v538_v13  ;;  %502 = vmatprep.subr.bf16.mxu1 %v559_v1 }
  0x18   :  { %468 = vmatprep.subr.bf16.mxu0 %v539_v16 }
  0x1a   :  { %503 = vmatpush3.bf16.msra.mxu1 %v548_v26 }
  0x1b   :  { %469 = vmatpush3.bf16.msra.mxu0 %v540_v18  ;;  %504 = vmatprep.subr.bf16.mxu1 %v559_v1 }
  0x1c   :  { %470 = vmatprep.subr.bf16.mxu0 %v541_v19 }
  0x1e   :  { %505 = vmatpush3.bf16.msra.mxu1 %v549_v27 }
  0x1f   :  { %471 = vmatpush3.bf16.msra.mxu0 %v542_v21  ;;  %506 = vmatprep.subr.bf16.mxu1 %v559_v1 }
  0x20   :  { %512 = vmatprep.subr.bf16.mxu0 %v559_v1 }
  0x22   :  { %202 = vmatmul.mubr.bf16.vlgmr.msra.gmra.mrb[0].mxu0 %v32_v23  ;;  %507 = vmatpush3.bf16.msra.mxu1 %v550_v28 }
  0x23   :  { %520 = vmatprep.mubr.msk.bf16.mxu0 %vm560_vm0, %v559_v1  ;;  %513 = vmatpush3.bf16.msra.mxu0 %v551_v38 }
  0x24   :  { %514 = vmatprep.subr.bf16.mxu0 %v559_v1 }
  0x27   :  { %515 = vmatpush3.bf16.msra.mxu0 %v552_v39 }
  0x28   :  { %516 = vmatprep.subr.bf16.mxu0 %v559_v1 }
  0x2b   :  { %517 = vmatpush3.bf16.msra.mxu0 %v553_v40 }
  0x2c   :  { %518 = vmatprep.subr.bf16.mxu0 %v559_v1 }
  0x2f   :  { %519 = vmatpush3.bf16.msra.mxu0 %v554_v41 }
  0x7e   :  { %v410_v53 = vpop.permute.xlu0 %409 }
  0xf5   :  { %v472_v29 = vpop.f32.mrb[0].mxu0 }
  0xf6   :  { %v473_v31 = vpop.f32.mrb[1].mxu0 }
  0xf7   :  { %v474_v32 = vadd.f32 %v473_v31, %v472_v29  ;;  %v475_v33 = vpop.f32.mrb[2].mxu0 }
  0xf8   :  { %v476_v34 = vpop.f32.mrb[3].mxu0 }
  0xf9   :  { %v204_v35 = vadd.f32 %v474_v32, %v424_v30 }
  0xfb   :  { %555 = vtanh.f32 %v204_v35 }
 0x105   :  { %v556_v36 = vpop.eup %555 }
 0x106   :  { %v210_v37 = vpack.c.bf16 %v556_v36, %v556_v36 }
 0x108   :  { %509 = vmatmul.mubr.bf16.vlgmr.msra.gmra.mrb[0].mxu1 %v210_v37 }
 0x1db   :  { %v316_v44 = vpop.f32.mrb[0].mxu1 }
 0x1dc   :  { %v317_v45 = vadd.f32 %v441_v43, %v316_v44  ;;  %v510_v46 = vpop.f32.mrb[1].mxu1 }
 0x1dd   :  { %v319_v47 = vpop.f32.mrb[2].mxu1 }
 0x1de   :  { %557 = vtanh.f32 %v317_v45  ;;  %v511_v48 = vpop.f32.mrb[3].mxu1 }
 0x1e8   :  { %v558_v49 = vpop.eup %557 }
 0x1e9   :  { %v323_v50 = vpack.c.bf16 %v558_v49, %v558_v49 }
 0x1eb   :  { %521 = vmatmul.mubr.msk.bf16.vlgmr.msra.gmra.mrb[4].mxu0 %vm363_vm1, %v323_v50 }
 0x2be   :  { %v401_v52 = vpop.f32.mrb[4].mxu0 }
 0x2bf   :  { %v402_v54 = vadd.f32 %v450_v51, %v401_v52  ;;  %v522_v55 = vpop.f32.mrb[5].mxu0 }
 0x2c0   :  { %v404_v56 = vpop.f32.mrb[6].mxu0 }
 0x2c1   :  { %v412_v57 = vmul.f32 %v410_v53, %v402_v54  ;;  %v523_v58 = vpop.f32.mrb[7].mxu0 }
 0x2c3   :  { %414 = vrot.lane.b32.xlu0 %v412_v57, %s561_s21 }
 0x335   :  { %v415_v59 = vpop.permute.xlu0 %414 }
 0x336   :  { %v417_v60 = vadd.f32 %v415_v59, %v402_v54 }
 0x338   :  { %419 = vst.msk [vmem:[%s734_s8] sm:$0xff] %vm418_vm2, %v417_v60 }

</bundles_post_ra>
